<compile_context>
chip_gen: v7x
topology: tpu7x:2x2x1
jax: 0.10.0
libtpu: 0.0.40
codegen_flags: <defaults>
</compile_context>

<pallas_src>
import jax
import jax.numpy as jnp
from jax.experimental import pallas as pl
from jax.experimental.pallas import tpu as pltpu


# ---------------------------------------------------------------------------
# Kernels
# ---------------------------------------------------------------------------

def _add_tiles_kernel(x_ref, emb_ref, o_ref):
    # x_ref / emb_ref / o_ref are (TILE_ROWS, W): the batch dim is squeezed by
    # the BlockSpec, so this is a plain same-shape VPU add (no broadcast).
    o_ref[...] = x_ref[...] + emb_ref[...]


def _make_resident_emb_kernel(tile_rows):
    # emb_ref holds the whole (row-padded) positional slice resident in VMEM;
    # its block index is constant so it is DMA'd exactly once.  The kernel
    # slices out the rows belonging to the current seq-tile.
    def kernel(x_ref, emb_ref, o_ref):
        start = pl.multiple_of(pl.program_id(0) * tile_rows, 8)
        o_ref[...] = x_ref[...] + emb_ref[pl.ds(start, tile_rows), :]
    return kernel


def _small_add_kernel(x_ref, emb_ref, o_ref):
    # Single-block fast path for tiny problems: one step, no pipelining.
    o_ref[...] = x_ref[...] + emb_ref[...][None, :, :]


# ---------------------------------------------------------------------------
# Tiled driver
# ---------------------------------------------------------------------------

def _choose_tile_rows(rows, row_bytes, target_bytes):
    """Whole row axis if it fits the byte target, else the largest multiple of
    8 rows under the target (>= 8 so the (8,128) block rule always holds)."""
    budget_rows = max(1, target_bytes // max(1, row_bytes))
    if rows <= budget_rows:
        return rows
    return max(8, (budget_rows // 8) * 8)


def _tiled_add(x3, emb2, *, target_tile_bytes, emb_resident_max_bytes):
    """x3: [B, R, W] (W lane-dense); emb2: [R, W]; returns x3 + emb2[None]."""
    B, R, W = x3.shape
    itemsize = jnp.dtype(x3.dtype).itemsize
    tile_rows = _choose_tile_rows(R, W * itemsize, target_tile_bytes)
    num_t = -(-R // tile_rows)                 # cdiv; ragged last tile is fine
    tile_bytes = tile_rows * W * itemsize

    x_spec = pl.BlockSpec((pl.Squeezed(), tile_rows, W), lambda t, b: (b, t, 0))
    out_spec = pl.BlockSpec((pl.Squeezed(), tile_rows, W), lambda t, b: (b, t, 0))

    r_pad = num_t * tile_rows
    emb_res_bytes = r_pad * W * itemsize
    use_resident = emb_res_bytes <= emb_resident_max_bytes

    if use_resident:
        # Option A: one resident emb block, fetched exactly once.
        if r_pad != R:
            emb2 = jnp.pad(emb2, ((0, r_pad - R), (0, 0)))
        emb_spec = pl.BlockSpec((r_pad, W), lambda t, b: (0, 0))
        kernel = _make_resident_emb_kernel(tile_rows)
        emb_vmem = 2 * emb_res_bytes           # conservative: assume 2 buffers
    else:
        # Option B: emb tile indexed only by t; with grid (T, B) it is fetched
        # once per seq-tile (total emb traffic ~= S*D), never once per (t, b).
        emb_spec = pl.BlockSpec((tile_rows, W), lambda t, b: (t, 0))
        kernel = _add_tiles_kernel
        emb_vmem = 2 * tile_bytes

    # 2x x-buffers + 2x out-buffers + emb, with headroom; 48 MiB cap keeps the
    # plan valid on v7x's 64 MiB VMEM (v5e/v6e have 128 MiB).
    vmem_need = 4 * tile_bytes + emb_vmem
    vmem_limit = min(48 << 20, max(16 << 20, (vmem_need * 3) // 2 + (2 << 20)))

    return pl.pallas_call(
        kernel,
        out_shape=jax.ShapeDtypeStruct((B, R, W), x3.dtype),
        grid_spec=pltpu.PrefetchScalarGridSpec(
            num_scalar_prefetch=0,
            grid=(num_t, B),                   # seq-tiles outer, batch inner
            in_specs=[x_spec, emb_spec],
            out_specs=out_spec,
        ),
        compiler_params=pltpu.CompilerParams(
            dimension_semantics=("parallel", "parallel"),
            vmem_limit_bytes=vmem_limit,
        ),
    )(x3, emb2)


# ---------------------------------------------------------------------------
# Public wrappers (forward-pass semantics of the PyTorch module)
# ---------------------------------------------------------------------------

def positional_encoding_add(x, emb_table, *,
                            target_tile_bytes=4 << 20,
                            emb_resident_max_bytes=4 << 20,
                            small_bytes=256 << 10):
    """x: [B, S, D]; emb_table: [num_positions >= S, D].  batched=True path."""
    B, S, D = x.shape
    # Match PyTorch type promotion (e.g. bf16 x + f32 table -> f32 result).
    out_dtype = jnp.promote_types(x.dtype, emb_table.dtype)
    x = x.astype(out_dtype)
    emb = emb_table[:S].astype(out_dtype)      # position lookup 0..S-1 == row slice
    itemsize = jnp.dtype(out_dtype).itemsize

    # Tiny problems (module default is B=2, S=8, D=32 ~= 2 KiB): one block, one
    # step -- fixed pipeline/step overhead would dominate anything fancier.
    if B * S * D * itemsize <= small_bytes:
        return pl.pallas_call(
            _small_add_kernel,
            out_shape=jax.ShapeDtypeStruct((B, S, D), out_dtype),
        )(x, emb)

    if D % 128 == 0:
        return _tiled_add(x, emb,
                          target_tile_bytes=target_tile_bytes,
                          emb_resident_max_bytes=emb_resident_max_bytes)

    # D not lane-dense: fold (seq, d_model) into rows of width 128 (pure bitcast
    # reshape when S*D % 128 == 0, otherwise pad the tiny flattened tail) so
    # every store is an unmasked, full-lane vst.
    flat = S * D
    R = -(-flat // 128)
    pad = R * 128 - flat
    x_f = x.reshape(B, flat)
    e_f = emb.reshape(flat)
    if pad:
        x_f = jnp.pad(x_f, ((0, 0), (0, pad)))
        e_f = jnp.pad(e_f, (0, pad))
    out = _tiled_add(x_f.reshape(B, R, 128), e_f.reshape(R, 128),
                     target_tile_bytes=target_tile_bytes,
                     emb_resident_max_bytes=emb_resident_max_bytes)
    out = out.reshape(B, R * 128)
    if pad:
        out = out[:, :flat]
    return out.reshape(B, S, D)


def positional_encoding_add_unbatched(x, emb_table, **kw):
    """x: [S, D]; matches the PyTorch module with batched=False."""
    return positional_encoding_add(x[None], emb_table, **kw)[0]


# ---------------------------------------------------------------------------
# Self-test
# ---------------------------------------------------------------------------

if __name__ == "__main__":
    key = jax.random.PRNGKey(0)
    keys = jax.random.split(key, 8)

    # 1) Module defaults: d_model=32, num_positions=20, batch=2, seq=8 (small path).
    d_model, num_positions, batch, seq_len = 32, 20, 2, 8
    table = jax.random.normal(keys[0], (num_positions, d_model), dtype=jnp.float32)
    x = jax.random.normal(keys[1], (batch, seq_len, d_model), dtype=jnp.float32)
    out = jax.block_until_ready(positional_encoding_add(x, table))
    assert out.shape == x.shape and out.dtype == x.dtype
    assert jnp.allclose(out, x + table[:seq_len][None, :, :], atol=1e-6)

    # Unbatched path (batched=False in the PyTorch module).
    out_u = jax.block_until_ready(positional_encoding_add_unbatched(x[0], table))
    assert jnp.allclose(out_u, x[0] + table[:seq_len], atol=1e-6)

    # 2) Lane-dense tiled path, resident emb, ragged last tile, odd batch.
    d2, s2, b2 = 256, 100, 3
    table2 = jax.random.normal(keys[2], (128, d2), dtype=jnp.float32)
    x2 = jax.random.normal(keys[3], (b2, s2, d2), dtype=jnp.float32)
    out2 = jax.block_until_ready(
        positional_encoding_add(x2, table2, target_tile_bytes=32 << 10, small_bytes=0))
    assert jnp.allclose(out2, x2 + table2[:s2][None, :, :], atol=1e-6)

    # 3) Same shapes, but force the tiled-emb (non-resident) variant.
    out3 = jax.block_until_ready(
        positional_encoding_add(x2, table2, target_tile_bytes=32 << 10,
                                emb_resident_max_bytes=0, small_bytes=0))
    assert jnp.allclose(out3, x2 + table2[:s2][None, :, :], atol=1e-6)

    # 4) D not a multiple of 128 and S*D not a multiple of 128 -> fold + pad path.
    d4, s4, b4 = 20, 50, 2
    table4 = jax.random.normal(keys[4], (64, d4), dtype=jnp.float32)
    x4 = jax.random.normal(keys[5], (b4, s4, d4), dtype=jnp.float32)
    out4 = jax.block_until_ready(positional_encoding_add(x4, table4, small_bytes=0))
    assert jnp.allclose(out4, x4 + table4[:s4][None, :, :], atol=1e-6)

    # 5) Dtype promotion matches PyTorch: bf16 x + f32 table -> f32 result.
    x5 = x.astype(jnp.bfloat16)
    out5 = jax.block_until_ready(positional_encoding_add(x5, table))
    assert out5.dtype == jnp.float32
    assert jnp.allclose(out5, x5.astype(jnp.float32) + table[:seq_len][None, :, :],
                        atol=1e-6)

    print("KERNEL_OK")
</pallas_src>

<mosaic_0001>
module attributes {stable_mosaic.version = 11 : i64} {
  func.func @_small_add_kernel(%arg0: memref<2x8x32xf32, #tpu.memory_space<vmem>>, %arg1: memref<8x32xf32, #tpu.memory_space<vmem>>, %arg2: memref<2x8x32xf32, #tpu.memory_space<vmem>>) attributes {dimension_semantics = [], scalar_prefetch = 0 : i64, scratch_operands = 0 : i64, tpu.core_type = #tpu.core_type<tc>} {
    %c0 = arith.constant 0 : index
    %c0_0 = arith.constant 0 : index
    %c0_1 = arith.constant 0 : index
    %0 = vector.load %arg0[%c0, %c0_0, %c0_1] : memref<2x8x32xf32, #tpu.memory_space<vmem>>, vector<2x8x32xf32>
    %c0_2 = arith.constant 0 : index
    %c0_3 = arith.constant 0 : index
    %1 = vector.load %arg1[%c0_2, %c0_3] : memref<8x32xf32, #tpu.memory_space<vmem>>, vector<8x32xf32>
    %2 = vector.shape_cast %1 : vector<8x32xf32> to vector<1x8x32xf32>
    %3 = vector.broadcast %2 : vector<1x8x32xf32> to vector<2x8x32xf32>
    %4 = arith.addf %0, %3 : vector<2x8x32xf32>
    %c0_4 = arith.constant 0 : index
    %c0_5 = arith.constant 0 : index
    %c0_6 = arith.constant 0 : index
    %5 = vector.load %arg2[%c0_4, %c0_5, %c0_6] : memref<2x8x32xf32, #tpu.memory_space<vmem>>, vector<2x8x32xf32>
    tpu.vector_store %arg2[%c0_4, %c0_5, %c0_6], %4 {strides = array<i32>} : memref<2x8x32xf32, #tpu.memory_space<vmem>>, vector<2x8x32xf32>,
    return
  }
}

</mosaic_0001>

<bundles_post_ra>
// kernel: tpu_custom_call.1
= control target key start
LH: loop header
LB: loop body
LE: loop exit
PB: predicated region body
PF: predicated region fallthrough
CT: control target
= control target key end

     0   :  { %7 = vsyncpa [#allocation3], 0  ;;  %s203_s0 = inlined_call_operand.hbm [shape: f32[2,8,32], index: 0, kind: input, shape index: {}]   ;;  %s204_s1 = inlined_call_operand.hbm [shape: f32[8,32], index: 1, kind: input, shape index: {}]   ;;  %s205_s2 = inlined_call_operand.hbm [shape: f32[2,8,32], index: 2, kind: output, shape index: {}]  }
   0x1   :  { %8 = vsyncpa [#allocation6], 0 }
   0x2   :  { %9 = vsyncpa [#allocation4], 0  ;;  %s141_s9 = smov [#allocation2]   ;;  %s69_s13 = scalar_lea.hbm %s203_s0, 256 }
   0x3   :  { %s15_s10 = sshll.u32 %s141_s9, 4  ;;  %p70_p0 = scmp.ne.s32.totalorder %s203_s0, %s69_s13  ;;  %s16_s10 = int_to_ptr.vmem [resolvable:$true] %s15_s10 }
   0x4   :  { %p73_p1 = scmp.lt.u32.totalorder %s69_s13, %s203_s0 }
   0x6   :  { %p75_p2 = pnand %p73_p1, %p70_p0 }
   0x8   :  { %78 = shalt.err (!%p75_p2)
}
   0x9   :  { %s79_s18 = scalar_lea.vmem %s16_s10, 256  ;;  %p84_p4 = scmp.lt.s32.totalorder %s16_s10, %s16_s10 }
   0xa   :  { %p80_p3 = scmp.ne.s32.totalorder %s16_s10, %s79_s18  ;;  %p85_p5 = scmp.lt.s32.totalorder %s79_s18, %s79_s18 }
   0xc   :  { %p86_p6 = por %p85_p5, %p84_p4 }
   0xe   :  { %p87_p7 = pnand %p86_p6, %p80_p3 }
  0x10   :  { %90 = shalt.err (!%p87_p7)
}
  0x11   :  { %s142_s19 = smov 128   ;;  %s143_s20 = smov 8  }
  0x12   :  { %21 = dma.hbm_to_vmem [thread:$0]  %s203_s0, 256, %s16_s10, [#allocation3], %s142_s19, %s142_s19, %s143_s20  }
  0x13   :  { %s144_s23 = smov [#allocation5]   ;;  %s91_s27 = scalar_lea.hbm %s204_s1, 128 }
  0x14   :  { %s28_s24 = sshll.u32 %s144_s23, 4  ;;  %p92_p8 = scmp.ne.s32.totalorder %s204_s1, %s91_s27  ;;  %s29_s24 = int_to_ptr.vmem [resolvable:$true] %s28_s24 }
  0x15   :  { %p95_p9 = scmp.lt.u32.totalorder %s91_s27, %s204_s1 }
  0x17   :  { %p97_p10 = pnand %p95_p9, %p92_p8 }
  0x19   :  { %100 = shalt.err (!%p97_p10)
}
  0x1a   :  { %s101_s4 = scalar_lea.vmem %s29_s24, 128  ;;  %p106_p12 = scmp.lt.s32.totalorder %s29_s24, %s29_s24 }
  0x1b   :  { %p102_p11 = scmp.ne.s32.totalorder %s29_s24, %s101_s4  ;;  %p107_p13 = scmp.lt.s32.totalorder %s101_s4, %s101_s4 }
  0x1d   :  { %p108_p0 = por %p107_p13, %p106_p12 }
  0x1f   :  { %p109_p1 = pnand %p108_p0, %p102_p11 }
  0x21   :  { %112 = shalt.err (!%p109_p1)
}
  0x22   :  { %31 = dma.hbm_to_vmem [thread:$0]  %s204_s1, 128, %s29_s24, [#allocation6]  }
  0x23   :  { %135 = dma.done.wait [#allocation3], 256  }
  0x24   :  { %136 = vsyncadd [#allocation3], 4294967040 }
  0x25   :  { %137 = dma.done.wait [#allocation6], 128  }
  0x26   :  { %138 = vsyncadd [#allocation6], 4294967168  ;;  %s145_s6 = smov [#allocation7]   ;;  %v38_v0 = vld [vmem:[#allocation2] sm:$0xff]  ;;  %v40_v1 = vld [vmem:[#allocation5] sm:$0xff]  ;;  %vm43_vm0 = vcmask 261120  }
  0x27   :  { %s51_s7 = sshll.u32 %s145_s6, 4  ;;  %v39_v2 = vld [vmem:[#allocation2 + $0x8] sm:$0xff]  ;;  %v41_v3 = vadd.f32 %v40_v1, %v38_v0  ;;  %s52_s7 = int_to_ptr.vmem [resolvable:$true] %s51_s7 }
  0x28   :  { %v42_v4 = vadd.f32 %v40_v1, %v39_v2  ;;  %s113_s8 = scalar_lea.vmem %s52_s7, 256  ;;  %p118_p3 = scmp.lt.s32.totalorder %s52_s7, %s52_s7 }
  0x29   :  { %44 = vst.msk [vmem:[#allocation7] sm:$0xff] %vm43_vm0, %v41_v3  ;;  %p114_p2 = scmp.ne.s32.totalorder %s52_s7, %s113_s8  ;;  %p119_p4 = scmp.lt.s32.totalorder %s113_s8, %s113_s8 }
  0x2a   :  { %45 = vst.msk [vmem:[#allocation7 + $0x8] sm:$0xff] %vm43_vm0, %v42_v4 }
  0x2b   :  { %p120_p5 = por %p119_p4, %p118_p3 }
  0x2d   :  { %p121_p6 = pnand %p120_p5, %p114_p2 }
  0x2f   :  { %124 = shalt.err (!%p121_p6)
}
  0x30   :  { %s125_s10 = scalar_lea.hbm %s205_s2, 256 }
  0x31   :  { %p126_p7 = scmp.ne.s32.totalorder %s205_s2, %s125_s10  ;;  %p129_p8 = scmp.lt.u32.totalorder %s125_s10, %s205_s2 }
  0x33   :  { %p131_p9 = pnand %p129_p8, %p126_p7 }
  0x35   :  { %134 = shalt.err (!%p131_p9)
}
  0x36   :  { %57 = dma.vmem_to_hbm [thread:$0]  %s52_s7, 256, %s205_s2, [#allocation4], %s142_s19, %s142_s19, %s143_s20  }
  0x37   :  { %139 = dma.done.wait [#allocation4], 256  }
  0x38   :  { %140 = vsyncadd [#allocation4], 4294967040 }
  0x39   :  { %61 = vsyncpa [#allocation3], 1 }
  0x3a   :  { %62 = vsyncpa [#allocation6], 1 }
  0x3b   :  { %63 = vsyncpa [#allocation4], 1 }

</bundles_post_ra>
